<compile_context>
chip_gen: v5e
topology: v5e:2x2
jax: 0.10.0
libtpu: 0.0.40
codegen_flags: <defaults>
</compile_context>

<pallas_src>
import jax
import jax.numpy as jnp
from jax.experimental import pallas as pl
from jax.experimental.pallas import tpu as pltpu


def _round_up(x, m):
    return ((x + m - 1) // m) * m


def _pointwise_matmul_kernel(x_ref, w_ref, o_ref):
    # Single lane-dense MXU matmul per M-tile; f32 accumulation.
    o_ref[...] = jnp.dot(
        x_ref[...], w_ref[...], preferred_element_type=jnp.float32
    ).astype(o_ref.dtype)


def upsampling_pixel_shuffle(x_ncdhw, weight, ratio=2, *, tm=512):
    """Forward pass of UpsamplingPixelShuffle.

    x_ncdhw: [N, Cin, D, H, W] float32
    weight : [Cout*r^3, Cin, 1, 1, 1] float32 (PyTorch Conv3d weight layout)
    returns: [N, Cout, D*r, H*r, W*r] float32
    """
    N, Cin, D, H, W = x_ncdhw.shape
    Cout_total = weight.shape[0]
    assert weight.shape == (Cout_total, Cin, 1, 1, 1)
    r = ratio
    assert Cout_total % (r * r * r) == 0
    out_channels = Cout_total // (r * r * r)

    # ---- glue (plain JAX): NCDHW -> flattened channels-last rows ----
    x_flat = jnp.transpose(x_ncdhw, (0, 2, 3, 4, 1)).reshape(-1, Cin)   # [M, Cin]
    M = x_flat.shape[0]
    w_mat = jnp.transpose(weight.reshape(Cout_total, Cin), (1, 0))      # [Cin, Cout_total]

    # Lane-dense output channels (pad to multiple of 128); pad M to a whole number
    # of tiles so arbitrary N*D*H*W works (remainder rows are zero, sliced off after).
    Cout_pad = _round_up(Cout_total, 128)
    tm = min(tm, _round_up(M, 8))
    M_pad = _round_up(M, tm)
    if Cout_pad != Cout_total:
        w_mat = jnp.pad(w_mat, ((0, 0), (0, Cout_pad - Cout_total)))
    if M_pad != M:
        x_flat = jnp.pad(x_flat, ((0, M_pad - M), (0, 0)))

    grid = (M_pad // tm,)
    out_flat = pl.pallas_call(
        _pointwise_matmul_kernel,
        out_shape=jax.ShapeDtypeStruct((M_pad, Cout_pad), x_ncdhw.dtype),
        grid=grid,
        in_specs=[
            pl.BlockSpec((tm, Cin), lambda i: (i, 0)),
            # full-extent weight block: stays VMEM-resident across all grid steps
            pl.BlockSpec((Cin, Cout_pad), lambda i: (0, 0)),
        ],
        out_specs=pl.BlockSpec((tm, Cout_pad), lambda i: (i, 0)),
        compiler_params=pltpu.CompilerParams(
            dimension_semantics=("parallel",)),
    )(x_flat, w_mat)

    conv = out_flat[:M, :Cout_total].reshape(N, D, H, W, Cout_total)

    # ---- glue: 3D pixel shuffle.  channel c = ((oc*r + rd)*r + rh)*r + rw ----
    out = conv.reshape(N, D, H, W, out_channels, r, r, r)
    out = jnp.transpose(out, (0, 4, 1, 5, 2, 6, 3, 7))   # [N, oc, D, rd, H, rh, W, rw]
    return out.reshape(N, out_channels, D * r, H * r, W * r)


def _reference_forward(x, weight, ratio):
    """Pure-XLA reference mirroring the PyTorch module exactly."""
    conv = jax.lax.conv_general_dilated(
        x, weight, window_strides=(1, 1, 1), padding="VALID",
        dimension_numbers=("NCDHW", "OIDHW", "NCDHW"),
        precision=jax.lax.Precision.HIGHEST)
    B, C, d, h, w = conv.shape
    r = ratio
    oc = C // (r * r * r)
    out = conv.reshape(B * oc, r, r, r, d, h, w)
    out = jnp.transpose(out, (0, 4, 1, 5, 2, 6, 3))
    return out.reshape(B, oc, d * r, h * r, w * r)


if __name__ == "__main__":
    key = jax.random.PRNGKey(0)
    kx, kw = jax.random.split(key)

    # small shapes consistent with the module
    N, Cin, out_ch, ratio = 2, 4, 4, 2
    D = H = W = 8
    Cout_total = out_ch * ratio ** 3          # 32 conv output channels

    x = jax.random.normal(kx, (N, Cin, D, H, W), dtype=jnp.float32)

    # deterministic Conv3d weight init (kaiming-uniform-style bound), bias=False
    fan_in = Cin * 1 * 1 * 1
    bound = 1.0 / (fan_in ** 0.5)
    weight = jax.random.uniform(kw, (Cout_total, Cin, 1, 1, 1),
                                dtype=jnp.float32, minval=-bound, maxval=bound)

    out = upsampling_pixel_shuffle(x, weight, ratio=ratio)
    out = jax.block_until_ready(out)
    assert out.shape == (N, out_ch, D * ratio, H * ratio, W * ratio)

    ref = _reference_forward(x, weight, ratio)
    if not jnp.allclose(out, ref, rtol=1e-5, atol=1e-5):
        raise AssertionError("Pallas UpsamplingPixelShuffle does not match reference")

    print("KERNEL_OK")
</pallas_src>

<mosaic_0001>
module attributes {stable_mosaic.version = 11 : i64} {
  func.func @_pointwise_matmul_kernel(%arg0: i32, %arg1: memref<512x4xf32, #tpu.memory_space<vmem>>, %arg2: memref<4x128xf32, #tpu.memory_space<vmem>>, %arg3: memref<512x128xf32, #tpu.memory_space<vmem>>) attributes {dimension_semantics = [#tpu.dimension_semantics<parallel>], iteration_bounds = array<i64: 2>, scalar_prefetch = 0 : i64, scratch_operands = 0 : i64, tpu.core_type = #tpu.core_type<tc>, window_params = [{transform_indices = @transform_0, window_bounds = array<i64: 512, 4>}, {pipeline_mode = #tpu.pipeline_mode<synchronous>, transform_indices = @transform_1, window_bounds = array<i64: 4, 128>}, {transform_indices = @transform_2, window_bounds = array<i64: 512, 128>}]} {
    %c0 = arith.constant 0 : index
    %c0_0 = arith.constant 0 : index
    %0 = vector.load %arg1[%c0, %c0_0] : memref<512x4xf32, #tpu.memory_space<vmem>>, vector<512x4xf32>
    %c0_1 = arith.constant 0 : index
    %c0_2 = arith.constant 0 : index
    %1 = vector.load %arg2[%c0_1, %c0_2] : memref<4x128xf32, #tpu.memory_space<vmem>>, vector<4x128xf32>
    %cst = arith.constant dense<0.000000e+00> : vector<512x128xf32>
    %2 = tpu.matmul %0, %1, %cst {dimension_numbers = #tpu.dot_dimension_numbers<[1], [0], [0], [1], [0, 0, 1, 1], [], []>} : vector<512x4xf32>, vector<4x128xf32>, vector<512x128xf32> -> vector<512x128xf32>
    %c0_3 = arith.constant 0 : index
    %c0_4 = arith.constant 0 : index
    %3 = vector.load %arg3[%c0_3, %c0_4] : memref<512x128xf32, #tpu.memory_space<vmem>>, vector<512x128xf32>
    tpu.vector_store %arg3[%c0_3, %c0_4], %2 {strides = array<i32>} : memref<512x128xf32, #tpu.memory_space<vmem>>, vector<512x128xf32>,
    return
  }
  func.func @transform_0(%arg0: i32) -> (i32, i32) {
    %c0_i32 = arith.constant 0 : i32
    %c0_i32_0 = arith.constant 0 : i32
    return %arg0, %c0_i32 : i32, i32
  }
  func.func @transform_1(%arg0: i32) -> (i32, i32) {
    %c0_i32 = arith.constant 0 : i32
    %c0_i32_0 = arith.constant 0 : i32
    %c0_i32_1 = arith.constant 0 : i32
    return %c0_i32, %c0_i32_0 : i32, i32
  }
  func.func @transform_2(%arg0: i32) -> (i32, i32) {
    %c0_i32 = arith.constant 0 : i32
    %c0_i32_0 = arith.constant 0 : i32
    return %arg0, %c0_i32 : i32, i32
  }
}

</mosaic_0001>

<bundles_post_ra>
// kernel: tpu_custom_call.1
= control target key start
LH: loop header
LB: loop body
LE: loop exit
PB: predicated region body
PF: predicated region fallthrough
CT: control target
= control target key end

     0   :  { %7 = vsyncpa [#allocation3], 0  ;;  %s1249_s0 = inlined_call_operand.vmem [shape: f32[1024,4], index: 0, kind: input, shape index: {}]   ;;  %s1250_s1 = inlined_call_operand.vmem [shape: f32[4,128], index: 1, kind: input, shape index: {}]   ;;  %s1251_s2 = inlined_call_operand.hbm [shape: f32[1024,128], index: 2, kind: output, shape index: {}]  }
   0x1   :  { %9 = vsyncpa [#allocation3 + $0x1], 0  ;;  %s961_s9 = smov 0   ;;  %s963_s10 = smov 0  }
   0x2   :  { %s965_s11 = smov 0   ;;  %s967_s12 = smov 0  }
   0x3 LB: > { %s982_s13 = sadd.s32 4294967295, %s942_s12   ;;  %s758_s14 = sadd.s32 4294967294, %s942_s12   ;;  %s942_s12 = sphi %s967_s12, %s1257_s12   ;;  %s938_s11 = sphi %s965_s11, %s1256_s11   ;;  %s934_s10 = sphi %s963_s10, %s1255_s10   ;;  %s930_s9 = sphi %s961_s9, %s1254_s9  }
   0x4   : > { %s986_s15 = sadd.s32 1, %s942_s12   ;;  %s69_s16 = sadd.s32 1, %s938_s11 }
   0x5   : > { %s66_s17 = ssub.s32 %s942_s12, %s986_s15  ;;  %p79_p0 = scmp.ne.s32.totalorder %s938_s11, %s934_s10 }
   0x6   : > { %p67_p1 = scmp.eq.s32.totalorder %s66_s17, 0  ;;  %p80_p2 = scmp.eq.s32.totalorder %s982_s13, 1 }
   0x7   : > { %p85_p3 = scmp.ne.s32.totalorder %s934_s10, %s930_s9  ;;  %p86_p4 = scmp.eq.s32.totalorder %s758_s14, 1 }
   0x8   : > { %s997_s18 = scalar_select %p67_p1, %s938_s11, %s69_s16  }
   0x9   : > { %p999_p5 = por %p80_p2, %p79_p0  ;;  %p1003_p6 = por %p86_p4, %p85_p3 }
   0xa   : > { %p761_p7 = scmp.ge.s32.totalorder %s942_s12, 1  ;;  %p116_p8 = scmp.lt.s32.totalorder %s942_s12, 3 }
   0xc   : > { %p117_p9 = pnand %p761_p7, %p116_p8 }
   0xd   : > { %s763_s23 = sshll.u32 (!%p117_p9), %s982_s13, 6  ;;  %s135_s28 = sand.u32 (!%p117_p9), 1, %s934_s10  }
   0xe   : > { %120 = sbr.rel (%p117_p9) target bundleno = 280 (0x118), region = 28  ;;  %p139_p10 = scmp.lt.s32.totalorder (!%p117_p9), %s763_s23, 127 }
   0xf   : > { %s762_s29 = sshll.u32 (!%p117_p9), %s135_s28, 9  ;;  %s835_s3 = sshll.u32 (!%p117_p9), %s982_s13, 9 }
  0x10   : > { %s1149_s30 = scalar_lea.vmem (!%p117_p9), [#allocation2], %s762_s29  ;;  %s692_s6 = scalar_lea.hbm (!%p117_p9), %s1251_s2, %s835_s3 }
  0x11   : > { %s693_s7 = sshll.u32 (!%p117_p9), %s1149_s30, 4  ;;  %s695_s8 = sshll.u32 (!%p117_p9), %s692_s6, 4  ;;  %s694_s7 = int_to_ptr.vmem [resolvable:$true] %s693_s7  ;;  %s696_s8 = int_to_ptr.hbm [resolvable:$true] %s695_s8 }
  0x12   : > { %s681_s13 = scalar_lea.sflag (!%p117_p9), [#allocation3], %s135_s28  ;;  %s894_s14 = sshra.s32 (!%p117_p9), %s696_s8, 4  ;;  %s895_s14 = int_to_ptr.hbm [resolvable:$true] %s894_s14 }
  0x13   : > { %v209_v0 = vld [vmem:[%s1250_s1] sm:$0xf]  ;;  %vm403_vm0 = vcmask 1043456   ;;  %s1259_s23 = smov (!%p139_p10, %s763_s23), 127  ;;  %vm210_vm1 = vcmask 31744   ;;  %s896_s16 = scalar_lea.hbm %s895_s14, 512 }
  0x14   : > { %837 = vmatpush.msk.msra.mxu2 %vm403_vm0, %v209_v0  ;;  %838 = vmatpush.msk.msra.mxu3 %vm403_vm0, %v209_v0  ;;  %s764_s24 = sshll.u32 %s1259_s23, 3  ;;  %p897_p11 = scmp.ne.s32.totalorder %s895_s14, %s896_s16 }
  0x15   : > { %765 = vmatpush.msk.msra.mxu0 %vm403_vm0, %v209_v0  ;;  %836 = vmatpush.msk.msra.mxu1 %vm403_vm0, %v209_v0  ;;  %s1016_s27 = scalar_lea.vmem %s1249_s0, %s764_s24  ;;  %s900_s22 = scalar_lea.hbm %s1251_s2, 1024 }
  0x16   : > { %v177_v1 = vld [vmem:[%s1016_s27 + $0x100] sm:$0xff]  ;;  %v178_v5 = vld [vmem:[%s1016_s27 + $0x108] sm:$0xff]  ;;  %v179_v9 = vld [vmem:[%s1016_s27 + $0x110] sm:$0xff]  ;;  %p898_p12 = pnand %p897_p11, %p999_p5  ;;  %p901_p0 = scmp.lt.s32.totalorder %s895_s14, %s1251_s2 }
  0x17   : > { %v193_v2 = vld [vmem:[%s1016_s27 + $0x180] sm:$0xff]  ;;  %798 = vmatmul.msk.f32.vlgmr.msra.gmra.mxu2 %vm210_vm1, %v177_v1  ;;  %v194_v6 = vld [vmem:[%s1016_s27 + $0x188] sm:$0xff]  ;;  %v195_v10 = vld [vmem:[%s1016_s27 + $0x190] sm:$0xff]  ;;  %p902_p1 = scmp.lt.s32.totalorder %s900_s22, %s896_s16 }
  0x18   : > { %v145_v3 = vld [vmem:[%s1016_s27] sm:$0xff]  ;;  %814 = vmatmul.msk.f32.vlgmr.msra.gmra.mxu3 %vm210_vm1, %v193_v2  ;;  %v146_v7 = vld [vmem:[%s1016_s27 + $0x8] sm:$0xff]  ;;  %v147_v11 = vld [vmem:[%s1016_s27 + $0x10] sm:$0xff]  ;;  %p899_p13 = pneg %p898_p12 }
  0x19   : > { %v161_v4 = vld [vmem:[%s1016_s27 + $0x80] sm:$0xff]  ;;  %766 = vmatmul.msk.f32.vlgmr.msra.gmra.mxu0 %vm210_vm1, %v145_v3  ;;  %v162_v8 = vld [vmem:[%s1016_s27 + $0x88] sm:$0xff]  ;;  %v163_v12 = vld [vmem:[%s1016_s27 + $0x90] sm:$0xff]  ;;  %p903_p2 = por %p902_p1, %p901_p0 }
  0x1a   : > { %782 = vmatmul.msk.f32.vlgmr.msra.gmra.mxu1 %vm210_vm1, %v161_v4  ;;  %v180_v13 = vld [vmem:[%s1016_s27 + $0x118] sm:$0xff]  ;;  %v181_v17 = vld [vmem:[%s1016_s27 + $0x120] sm:$0xff]  ;;  %v182_v21 = vld [vmem:[%s1016_s27 + $0x128] sm:$0xff] }
  0x1b   : > { %v196_v14 = vld [vmem:[%s1016_s27 + $0x198] sm:$0xff]  ;;  %v197_v18 = vld [vmem:[%s1016_s27 + $0x1a0] sm:$0xff]  ;;  %v198_v22 = vld [vmem:[%s1016_s27 + $0x1a8] sm:$0xff]  ;;  %p904_p3 = pnand %p903_p2, %p899_p13 }
  0x1c   : > { %v148_v15 = vld [vmem:[%s1016_s27 + $0x18] sm:$0xff]  ;;  %v149_v19 = vld [vmem:[%s1016_s27 + $0x20] sm:$0xff]  ;;  %v150_v23 = vld [vmem:[%s1016_s27 + $0x28] sm:$0xff] }
  0x1d   : > { %v164_v16 = vld [vmem:[%s1016_s27 + $0x98] sm:$0xff]  ;;  %v165_v20 = vld [vmem:[%s1016_s27 + $0xa0] sm:$0xff]  ;;  %v166_v24 = vld [vmem:[%s1016_s27 + $0xa8] sm:$0xff] }
  0x1e   : > { %v183_v25 = vld [vmem:[%s1016_s27 + $0x130] sm:$0xff]  ;;  %v184_v29 = vld [vmem:[%s1016_s27 + $0x138] sm:$0xff]  ;;  %v185_v33 = vld [vmem:[%s1016_s27 + $0x140] sm:$0xff] }
  0x1f   : > { %799 = vmatmul.msk.f32.gmra.mxu2 %vm210_vm1, %v178_v5  ;;  %v199_v26 = vld [vmem:[%s1016_s27 + $0x1b0] sm:$0xff]  ;;  %v200_v30 = vld [vmem:[%s1016_s27 + $0x1b8] sm:$0xff]  ;;  %v201_v34 = vld [vmem:[%s1016_s27 + $0x1c0] sm:$0xff] }
  0x20   : > { %815 = vmatmul.msk.f32.gmra.mxu3 %vm210_vm1, %v194_v6  ;;  %v151_v27 = vld [vmem:[%s1016_s27 + $0x30] sm:$0xff]  ;;  %v152_v31 = vld [vmem:[%s1016_s27 + $0x38] sm:$0xff]  ;;  %v153_v35 = vld [vmem:[%s1016_s27 + $0x40] sm:$0xff] }
  0x21   : > { %767 = vmatmul.msk.f32.gmra.mxu0 %vm210_vm1, %v146_v7  ;;  %v167_v28 = vld [vmem:[%s1016_s27 + $0xb0] sm:$0xff]  ;;  %v168_v32 = vld [vmem:[%s1016_s27 + $0xb8] sm:$0xff]  ;;  %v169_v36 = vld [vmem:[%s1016_s27 + $0xc0] sm:$0xff] }
  0x22   : > { %783 = vmatmul.msk.f32.gmra.mxu1 %vm210_vm1, %v162_v8  ;;  %v186_v37 = vld [vmem:[%s1016_s27 + $0x148] sm:$0xff]  ;;  %v187_v41 = vld [vmem:[%s1016_s27 + $0x150] sm:$0xff]  ;;  %v188_v45 = vld [vmem:[%s1016_s27 + $0x158] sm:$0xff] }
  0x23   : > { %v202_v38 = vld [vmem:[%s1016_s27 + $0x1c8] sm:$0xff]  ;;  %v203_v42 = vld [vmem:[%s1016_s27 + $0x1d0] sm:$0xff]  ;;  %v204_v46 = vld [vmem:[%s1016_s27 + $0x1d8] sm:$0xff] }
  0x24   : > { %v154_v39 = vld [vmem:[%s1016_s27 + $0x48] sm:$0xff]  ;;  %v155_v43 = vld [vmem:[%s1016_s27 + $0x50] sm:$0xff]  ;;  %v156_v47 = vld [vmem:[%s1016_s27 + $0x58] sm:$0xff] }
  0x25   : > { %v170_v40 = vld [vmem:[%s1016_s27 + $0xc8] sm:$0xff]  ;;  %v171_v44 = vld [vmem:[%s1016_s27 + $0xd0] sm:$0xff]  ;;  %v172_v48 = vld [vmem:[%s1016_s27 + $0xd8] sm:$0xff] }
  0x26   : > { %v189_v49 = vld [vmem:[%s1016_s27 + $0x160] sm:$0xff]  ;;  %v190_v53 = vld [vmem:[%s1016_s27 + $0x168] sm:$0xff]  ;;  %v191_v57 = vld [vmem:[%s1016_s27 + $0x170] sm:$0xff] }
  0x27   : > { %800 = vmatmul.msk.f32.gmra.mxu2 %vm210_vm1, %v179_v9  ;;  %v205_v50 = vld [vmem:[%s1016_s27 + $0x1e0] sm:$0xff]  ;;  %v206_v54 = vld [vmem:[%s1016_s27 + $0x1e8] sm:$0xff]  ;;  %v207_v58 = vld [vmem:[%s1016_s27 + $0x1f0] sm:$0xff] }
  0x28   : > { %816 = vmatmul.msk.f32.gmra.mxu3 %vm210_vm1, %v195_v10  ;;  %v157_v51 = vld [vmem:[%s1016_s27 + $0x60] sm:$0xff]  ;;  %v158_v55 = vld [vmem:[%s1016_s27 + $0x68] sm:$0xff]  ;;  %v159_v59 = vld [vmem:[%s1016_s27 + $0x70] sm:$0xff] }
  0x29   : > { %768 = vmatmul.msk.f32.gmra.mxu0 %vm210_vm1, %v147_v11  ;;  %v173_v52 = vld [vmem:[%s1016_s27 + $0xe0] sm:$0xff]  ;;  %v174_v56 = vld [vmem:[%s1016_s27 + $0xe8] sm:$0xff]  ;;  %v175_v60 = vld [vmem:[%s1016_s27 + $0xf0] sm:$0xff] }
  0x2a   : > { %784 = vmatmul.msk.f32.gmra.mxu1 %vm210_vm1, %v163_v12  ;;  %v192_v61 = vld [vmem:[%s1016_s27 + $0x178] sm:$0xff] }
  0x2b   : > { %v208_v62 = vld [vmem:[%s1016_s27 + $0x1f8] sm:$0xff] }
  0x2c   : > { %v160_v63 = vld [vmem:[%s1016_s27 + $0x78] sm:$0xff] }
  0x2d   : > { %v176_v0 = vld [vmem:[%s1016_s27 + $0xf8] sm:$0xff] }
  0x2f   : > { %801 = vmatmul.msk.f32.gmra.mxu2 %vm210_vm1, %v180_v13 }
  0x30   : > { %817 = vmatmul.msk.f32.gmra.mxu3 %vm210_vm1, %v196_v14 }
  0x31   : > { %769 = vmatmul.msk.f32.gmra.mxu0 %vm210_vm1, %v148_v15 }
  0x32   : > { %785 = vmatmul.msk.f32.gmra.mxu1 %vm210_vm1, %v164_v16 }
  0x37   : > { %802 = vmatmul.msk.f32.gmra.mxu2 %vm210_vm1, %v181_v17 }
  0x38   : > { %818 = vmatmul.msk.f32.gmra.mxu3 %vm210_vm1, %v197_v18 }
  0x39   : > { %770 = vmatmul.msk.f32.gmra.mxu0 %vm210_vm1, %v149_v19 }
  0x3a   : > { %786 = vmatmul.msk.f32.gmra.mxu1 %vm210_vm1, %v165_v20 }
  0x3f   : > { %803 = vmatmul.msk.f32.gmra.mxu2 %vm210_vm1, %v182_v21 }
  0x40   : > { %819 = vmatmul.msk.f32.gmra.mxu3 %vm210_vm1, %v198_v22 }
  0x41   : > { %771 = vmatmul.msk.f32.gmra.mxu0 %vm210_vm1, %v150_v23 }
  0x42   : > { %787 = vmatmul.msk.f32.gmra.mxu1 %vm210_vm1, %v166_v24 }
  0x47   : > { %804 = vmatmul.msk.f32.gmra.mxu2 %vm210_vm1, %v183_v25 }
  0x48   : > { %820 = vmatmul.msk.f32.gmra.mxu3 %vm210_vm1, %v199_v26 }
  0x49   : > { %772 = vmatmul.msk.f32.gmra.mxu0 %vm210_vm1, %v151_v27 }
  0x4a   : > { %788 = vmatmul.msk.f32.gmra.mxu1 %vm210_vm1, %v167_v28 }
  0x4f   : > { %805 = vmatmul.msk.f32.gmra.mxu2 %vm210_vm1, %v184_v29 }
  0x50   : > { %821 = vmatmul.msk.f32.gmra.mxu3 %vm210_vm1, %v200_v30 }
  0x51   : > { %773 = vmatmul.msk.f32.gmra.mxu0 %vm210_vm1, %v152_v31 }
  0x52   : > { %789 = vmatmul.msk.f32.gmra.mxu1 %vm210_vm1, %v168_v32 }
  0x57   : > { %806 = vmatmul.msk.f32.gmra.mxu2 %vm210_vm1, %v185_v33 }
  0x58   : > { %822 = vmatmul.msk.f32.gmra.mxu3 %vm210_vm1, %v201_v34 }
  0x59   : > { %774 = vmatmul.msk.f32.gmra.mxu0 %vm210_vm1, %v153_v35 }
  0x5a   : > { %790 = vmatmul.msk.f32.gmra.mxu1 %vm210_vm1, %v169_v36 }
  0x5f   : > { %807 = vmatmul.msk.f32.gmra.mxu2 %vm210_vm1, %v186_v37 }
  0x60   : > { %823 = vmatmul.msk.f32.gmra.mxu3 %vm210_vm1, %v202_v38 }
  0x61   : > { %775 = vmatmul.msk.f32.gmra.mxu0 %vm210_vm1, %v154_v39 }
  0x62   : > { %791 = vmatmul.msk.f32.gmra.mxu1 %vm210_vm1, %v170_v40 }
  0x67   : > { %808 = vmatmul.msk.f32.gmra.mxu2 %vm210_vm1, %v187_v41 }
  0x68   : > { %824 = vmatmul.msk.f32.gmra.mxu3 %vm210_vm1, %v203_v42 }
  0x69   : > { %776 = vmatmul.msk.f32.gmra.mxu0 %vm210_vm1, %v155_v43 }
  0x6a   : > { %792 = vmatmul.msk.f32.gmra.mxu1 %vm210_vm1, %v171_v44 }
  0x6f   : > { %809 = vmatmul.msk.f32.gmra.mxu2 %vm210_vm1, %v188_v45 }
  0x70   : > { %825 = vmatmul.msk.f32.gmra.mxu3 %vm210_vm1, %v204_v46 }
  0x71   : > { %777 = vmatmul.msk.f32.gmra.mxu0 %vm210_vm1, %v156_v47 }
  0x72   : > { %793 = vmatmul.msk.f32.gmra.mxu1 %vm210_vm1, %v172_v48 }
  0x77   : > { %810 = vmatmul.msk.f32.gmra.mxu2 %vm210_vm1, %v189_v49 }
  0x78   : > { %826 = vmatmul.msk.f32.gmra.mxu3 %vm210_vm1, %v205_v50 }
  0x79   : > { %778 = vmatmul.msk.f32.gmra.mxu0 %vm210_vm1, %v157_v51 }
  0x7a   : > { %794 = vmatmul.msk.f32.gmra.mxu1 %vm210_vm1, %v173_v52 }
  0x7f   : > { %811 = vmatmul.msk.f32.gmra.mxu2 %vm210_vm1, %v190_v53 }
  0x80   : > { %827 = vmatmul.msk.f32.gmra.mxu3 %vm210_vm1, %v206_v54 }
  0x81   : > { %779 = vmatmul.msk.f32.gmra.mxu0 %vm210_vm1, %v158_v55 }
  0x82   : > { %795 = vmatmul.msk.f32.gmra.mxu1 %vm210_vm1, %v174_v56 }
  0x87   : > { %812 = vmatmul.msk.f32.gmra.mxu2 %vm210_vm1, %v191_v57 }
  0x88   : > { %828 = vmatmul.msk.f32.gmra.mxu3 %vm210_vm1, %v207_v58 }
  0x89   : > { %780 = vmatmul.msk.f32.gmra.mxu0 %vm210_vm1, %v159_v59 }
  0x8a   : > { %796 = vmatmul.msk.f32.gmra.mxu1 %vm210_vm1, %v175_v60 }
  0x8f   : > { %813 = vmatmul.msk.f32.gmra.mxu2 %vm210_vm1, %v192_v61 }
  0x90   : > { %829 = vmatmul.msk.f32.gmra.mxu3 %vm210_vm1, %v208_v62 }
  0x91   : > { %781 = vmatmul.msk.f32.gmra.mxu0 %vm210_vm1, %v160_v63 }
  0x92   : > { %797 = vmatmul.msk.f32.gmra.mxu1 %vm210_vm1, %v176_v0 }
  0x96   : > { %v424_v1 = vpop.f32.mrf.mxu0 }
  0x97   : > { %v472_v2 = vpop.f32.mrf.mxu1  ;;  %616 = vst [vmem:[%s1149_s30] sm:$0xff] %v424_v1 }
  0x98   : > { %632 = vst [vmem:[%s1149_s30 + $0x80] sm:$0xff] %v472_v2 }
  0x9a   : > { %v520_v3 = vpop.f32.mrf.mxu2 }
  0x9b   : > { %v568_v4 = vpop.f32.mrf.mxu3  ;;  %648 = vst [vmem:[%s1149_s30 + $0x100] sm:$0xff] %v520_v3 }
  0x9c   : > { %664 = vst [vmem:[%s1149_s30 + $0x180] sm:$0xff] %v568_v4 }
  0x9e   : > { %v427_v5 = vpop.f32.mrf.mxu0 }
  0x9f   : > { %v475_v6 = vpop.f32.mrf.mxu1  ;;  %617 = vst [vmem:[%s1149_s30 + $0x8] sm:$0xff] %v427_v5 }
  0xa0   : > { %633 = vst [vmem:[%s1149_s30 + $0x88] sm:$0xff] %v475_v6 }
  0xa2   : > { %v523_v7 = vpop.f32.mrf.mxu2 }
  0xa3   : > { %v571_v8 = vpop.f32.mrf.mxu3  ;;  %649 = vst [vmem:[%s1149_s30 + $0x108] sm:$0xff] %v523_v7 }
  0xa4   : > { %665 = vst [vmem:[%s1149_s30 + $0x188] sm:$0xff] %v571_v8 }
  0xa6   : > { %v430_v9 = vpop.f32.mrf.mxu0 }
  0xa7   : > { %v478_v10 = vpop.f32.mrf.mxu1  ;;  %618 = vst [vmem:[%s1149_s30 + $0x10] sm:$0xff] %v430_v9 }
  0xa8   : > { %634 = vst [vmem:[%s1149_s30 + $0x90] sm:$0xff] %v478_v10 }
  0xaa   : > { %v526_v11 = vpop.f32.mrf.mxu2 }
  0xab   : > { %v574_v12 = vpop.f32.mrf.mxu3  ;;  %650 = vst [vmem:[%s1149_s30 + $0x110] sm:$0xff] %v526_v11 }
  0xac   : > { %666 = vst [vmem:[%s1149_s30 + $0x190] sm:$0xff] %v574_v12 }
  0xae   : > { %v433_v13 = vpop.f32.mrf.mxu0 }
  0xaf   : > { %v481_v14 = vpop.f32.mrf.mxu1  ;;  %619 = vst [vmem:[%s1149_s30 + $0x18] sm:$0xff] %v433_v13 }
  0xb0   : > { %635 = vst [vmem:[%s1149_s30 + $0x98] sm:$0xff] %v481_v14 }
  0xb2   : > { %v529_v15 = vpop.f32.mrf.mxu2 }
  0xb3   : > { %v577_v16 = vpop.f32.mrf.mxu3  ;;  %651 = vst [vmem:[%s1149_s30 + $0x118] sm:$0xff] %v529_v15 }
  0xb4   : > { %667 = vst [vmem:[%s1149_s30 + $0x198] sm:$0xff] %v577_v16 }
  0xb6   : > { %v436_v17 = vpop.f32.mrf.mxu0 }
  0xb7   : > { %v484_v18 = vpop.f32.mrf.mxu1  ;;  %620 = vst [vmem:[%s1149_s30 + $0x20] sm:$0xff] %v436_v17 }
  0xb8   : > { %636 = vst [vmem:[%s1149_s30 + $0xa0] sm:$0xff] %v484_v18 }
  0xba   : > { %v532_v19 = vpop.f32.mrf.mxu2 }
  0xbb   : > { %v580_v20 = vpop.f32.mrf.mxu3  ;;  %652 = vst [vmem:[%s1149_s30 + $0x120] sm:$0xff] %v532_v19 }
  0xbc   : > { %668 = vst [vmem:[%s1149_s30 + $0x1a0] sm:$0xff] %v580_v20 }
  0xbe   : > { %v439_v21 = vpop.f32.mrf.mxu0 }
  0xbf   : > { %v487_v22 = vpop.f32.mrf.mxu1  ;;  %621 = vst [vmem:[%s1149_s30 + $0x28] sm:$0xff] %v439_v21 }
  0xc0   : > { %637 = vst [vmem:[%s1149_s30 + $0xa8] sm:$0xff] %v487_v22 }
  0xc2   : > { %v535_v23 = vpop.f32.mrf.mxu2 }
  0xc3   : > { %v583_v24 = vpop.f32.mrf.mxu3  ;;  %653 = vst [vmem:[%s1149_s30 + $0x128] sm:$0xff] %v535_v23 }
  0xc4   : > { %669 = vst [vmem:[%s1149_s30 + $0x1a8] sm:$0xff] %v583_v24 }
  0xc6   : > { %v442_v25 = vpop.f32.mrf.mxu0 }
  0xc7   : > { %v490_v26 = vpop.f32.mrf.mxu1  ;;  %622 = vst [vmem:[%s1149_s30 + $0x30] sm:$0xff] %v442_v25 }
  0xc8   : > { %638 = vst [vmem:[%s1149_s30 + $0xb0] sm:$0xff] %v490_v26 }
  0xca   : > { %v538_v27 = vpop.f32.mrf.mxu2 }
  0xcb   : > { %v586_v28 = vpop.f32.mrf.mxu3  ;;  %654 = vst [vmem:[%s1149_s30 + $0x130] sm:$0xff] %v538_v27 }
  0xcc   : > { %670 = vst [vmem:[%s1149_s30 + $0x1b0] sm:$0xff] %v586_v28 }
  0xce   : > { %v445_v29 = vpop.f32.mrf.mxu0 }
  0xcf   : > { %v493_v30 = vpop.f32.mrf.mxu1  ;;  %623 = vst [vmem:[%s1149_s30 + $0x38] sm:$0xff] %v445_v29 }
  0xd0   : > { %639 = vst [vmem:[%s1149_s30 + $0xb8] sm:$0xff] %v493_v30 }
  0xd2   : > { %v541_v31 = vpop.f32.mrf.mxu2 }
  0xd3   : > { %v589_v32 = vpop.f32.mrf.mxu3  ;;  %655 = vst [vmem:[%s1149_s30 + $0x138] sm:$0xff] %v541_v31 }
  0xd4   : > { %671 = vst [vmem:[%s1149_s30 + $0x1b8] sm:$0xff] %v589_v32 }
  0xd6   : > { %v448_v33 = vpop.f32.mrf.mxu0 }
  0xd7   : > { %v496_v34 = vpop.f32.mrf.mxu1  ;;  %624 = vst [vmem:[%s1149_s30 + $0x40] sm:$0xff] %v448_v33 }
  0xd8   : > { %640 = vst [vmem:[%s1149_s30 + $0xc0] sm:$0xff] %v496_v34 }
  0xda   : > { %v544_v35 = vpop.f32.mrf.mxu2 }
  0xdb   : > { %v592_v36 = vpop.f32.mrf.mxu3  ;;  %656 = vst [vmem:[%s1149_s30 + $0x140] sm:$0xff] %v544_v35 }
  0xdc   : > { %672 = vst [vmem:[%s1149_s30 + $0x1c0] sm:$0xff] %v592_v36 }
  0xde   : > { %v451_v37 = vpop.f32.mrf.mxu0 }
  0xdf   : > { %v499_v38 = vpop.f32.mrf.mxu1  ;;  %625 = vst [vmem:[%s1149_s30 + $0x48] sm:$0xff] %v451_v37 }
  0xe0   : > { %641 = vst [vmem:[%s1149_s30 + $0xc8] sm:$0xff] %v499_v38 }
  0xe2   : > { %v547_v39 = vpop.f32.mrf.mxu2 }
  0xe3   : > { %v595_v40 = vpop.f32.mrf.mxu3  ;;  %657 = vst [vmem:[%s1149_s30 + $0x148] sm:$0xff] %v547_v39 }
  0xe4   : > { %673 = vst [vmem:[%s1149_s30 + $0x1c8] sm:$0xff] %v595_v40 }
  0xe6   : > { %v454_v41 = vpop.f32.mrf.mxu0 }
  0xe7   : > { %v502_v42 = vpop.f32.mrf.mxu1  ;;  %626 = vst [vmem:[%s1149_s30 + $0x50] sm:$0xff] %v454_v41 }
  0xe8   : > { %642 = vst [vmem:[%s1149_s30 + $0xd0] sm:$0xff] %v502_v42 }
  0xea   : > { %v550_v43 = vpop.f32.mrf.mxu2 }
  0xeb   : > { %v598_v44 = vpop.f32.mrf.mxu3  ;;  %658 = vst [vmem:[%s1149_s30 + $0x150] sm:$0xff] %v550_v43 }
  0xec   : > { %674 = vst [vmem:[%s1149_s30 + $0x1d0] sm:$0xff] %v598_v44 }
  0xee   : > { %v457_v45 = vpop.f32.mrf.mxu0 }
  0xef   : > { %v505_v46 = vpop.f32.mrf.mxu1  ;;  %627 = vst [vmem:[%s1149_s30 + $0x58] sm:$0xff] %v457_v45 }
  0xf0   : > { %643 = vst [vmem:[%s1149_s30 + $0xd8] sm:$0xff] %v505_v46 }
  0xf2   : > { %v553_v47 = vpop.f32.mrf.mxu2 }
  0xf3   : > { %v601_v48 = vpop.f32.mrf.mxu3  ;;  %659 = vst [vmem:[%s1149_s30 + $0x158] sm:$0xff] %v553_v47 }
  0xf4   : > { %675 = vst [vmem:[%s1149_s30 + $0x1d8] sm:$0xff] %v601_v48 }
  0xf6   : > { %v460_v49 = vpop.f32.mrf.mxu0 }
  0xf7   : > { %v508_v50 = vpop.f32.mrf.mxu1  ;;  %628 = vst [vmem:[%s1149_s30 + $0x60] sm:$0xff] %v460_v49 }
  0xf8   : > { %644 = vst [vmem:[%s1149_s30 + $0xe0] sm:$0xff] %v508_v50 }
  0xfa   : > { %v556_v51 = vpop.f32.mrf.mxu2 }
  0xfb   : > { %v604_v52 = vpop.f32.mrf.mxu3  ;;  %660 = vst [vmem:[%s1149_s30 + $0x160] sm:$0xff] %v556_v51 }
  0xfc   : > { %676 = vst [vmem:[%s1149_s30 + $0x1e0] sm:$0xff] %v604_v52 }
  0xfe   : > { %v463_v53 = vpop.f32.mrf.mxu0 }
  0xff   : > { %v511_v54 = vpop.f32.mrf.mxu1  ;;  %629 = vst [vmem:[%s1149_s30 + $0x68] sm:$0xff] %v463_v53 }
 0x100   : > { %645 = vst [vmem:[%s1149_s30 + $0xe8] sm:$0xff] %v511_v54 }
 0x102   : > { %v559_v55 = vpop.f32.mrf.mxu2 }
 0x103   : > { %v607_v56 = vpop.f32.mrf.mxu3  ;;  %661 = vst [vmem:[%s1149_s30 + $0x168] sm:$0xff] %v559_v55 }
 0x104   : > { %677 = vst [vmem:[%s1149_s30 + $0x1e8] sm:$0xff] %v607_v56 }
 0x106   : > { %v466_v57 = vpop.f32.mrf.mxu0 }
 0x107   : > { %v514_v58 = vpop.f32.mrf.mxu1  ;;  %630 = vst [vmem:[%s1149_s30 + $0x70] sm:$0xff] %v466_v57 }
 0x108   : > { %646 = vst [vmem:[%s1149_s30 + $0xf0] sm:$0xff] %v514_v58 }
 0x10a   : > { %v562_v59 = vpop.f32.mrf.mxu2 }
 0x10b   : > { %v610_v60 = vpop.f32.mrf.mxu3  ;;  %662 = vst [vmem:[%s1149_s30 + $0x170] sm:$0xff] %v562_v59 }
 0x10c   : > { %678 = vst [vmem:[%s1149_s30 + $0x1f0] sm:$0xff] %v610_v60 }
 0x10e   : > { %v469_v61 = vpop.f32.mrf.mxu0 }
 0x10f   : > { %v517_v62 = vpop.f32.mrf.mxu1  ;;  %631 = vst [vmem:[%s1149_s30 + $0x78] sm:$0xff] %v469_v61 }
 0x110   : > { %647 = vst [vmem:[%s1149_s30 + $0xf8] sm:$0xff] %v517_v62 }
 0x112   : > { %v565_v63 = vpop.f32.mrf.mxu2 }
 0x113   : > { %v613_v0 = vpop.f32.mrf.mxu3  ;;  %663 = vst [vmem:[%s1149_s30 + $0x178] sm:$0xff] %v565_v63 }
 0x114   : > { %679 = vst [vmem:[%s1149_s30 + $0x1f8] sm:$0xff] %v613_v0 }
 0x115   : > { %907 = shalt.err (!%p904_p3)
}
 0x116   : > { %s944_s25 = smov 128   ;;  %s945_s26 = smov 8  }
 0x117   : > { %839 = dma.vmem_to_hbm [thread:$0]  (%p999_p5), %s694_s7, 8192, %s696_s8, %s681_s13, %s944_s25, %s944_s25, %s945_s26  }
 0x118 PF: > { %p845_p4 = scmp.ge.s32.totalorder %s942_s12, 2  ;;  %s710_s27 = sand.u32 1, %s930_s9  }
 0x119   : > { %s711_s28 = scalar_lea.sflag [#allocation3], %s710_s27 }
 0x11a   : > { %p842_p7 = pnand %p845_p4, %p1003_p6 }
 0x11c   : > { %p843_p8 = pneg %p842_p7 }
 0x11e   : > { %925 = dma.done.wait (%p843_p8), %s711_s28, 8192  }
 0x11f   : > { %927 = vsyncadd (%p843_p8), %s711_s28, 4294959104  ;;  %p12_p9 = scmp.ge.s32.totalorder %s986_s15, 4   ;;  %s1254_s9 = smov %s934_s10 }
 0x120   : > { %s1255_s10 = smov %s938_s11  ;;  %s1256_s11 = smov %s997_s18 }
 0x121   : > { %s1257_s12 = smov %s986_s15  ;;  %14 = sbr.rel (!%p12_p9) target bundleno = 3 (0x3), region = 63 }
 0x126   :  { %717 = vsyncpa [#allocation3], 1 }
 0x127   :  { %719 = vsyncpa [#allocation3 + $0x1], 1 }

</bundles_post_ra>
